<compile_context>
chip_gen: v7x
topology: tpu7x:2x2x1
jax: 0.10.0
libtpu: 0.0.40
codegen_flags: <defaults>
</compile_context>

<pallas_src>
import functools
import math

import jax
import jax.numpy as jnp
from jax.experimental import pallas as pl
from jax.experimental.pallas import tpu as pltpu

BN_EPS = 1e-5
_LANE = 128
_MAX_TR = 4096            # cap on the row (lane) tile
_VMEM_INFO = None


def _vmem_budget():
    """(vmem_limit_bytes, per-step tile budget), generation-aware."""
    global _VMEM_INFO
    if _VMEM_INFO is None:
        try:
            cap = int(pltpu.get_tpu_info().vmem_capacity_bytes)
        except Exception:  # be robust to older jax / missing attribute
            cap = 64 * 1024 * 1024
        limit = min(64 * 1024 * 1024, max(32 * 1024 * 1024, int(cap * 0.65)))
        _VMEM_INFO = (limit, limit // 6)
    return _VMEM_INFO


def _pick_tr(r, per_row_bytes, budget):
    """Row (lane) tile: multiple of 128, sized to the per-step budget."""
    tr = budget // max(per_row_bytes, 1)
    tr = min(_MAX_TR, max(_LANE, (tr // _LANE) * _LANE))
    if r <= tr:
        return r, 1, r                      # one full-extent tile, no padding
    num = -(-r // tr)
    return tr, num, num * tr


# ---------------------------------------------------------------------------
# Pallas kernels (channel-first: blocks are (C, rows_tile), rows on lanes)
# ---------------------------------------------------------------------------
def _conv_cf_kernel(*refs, prologue, needs_mask, r_valid, tr):
    """y = W @ [relu(x*scale+shift) | x]  (bf16 MXU, f32 acc) + per-program BN stats."""
    if prologue:
        x_ref, w_ref, sc_ref, sh_ref, y_ref, ps_ref, pq_ref = refs
    else:
        x_ref, w_ref, y_ref, ps_ref, pq_ref = refs

    x = x_ref[...]
    if prologue:   # fused bn+ReLU of the previous layer (no HBM round trip of a2)
        x = jnp.maximum(x.astype(jnp.float32) * sc_ref[...] + sh_ref[...], 0.0)
    xb = x.astype(jnp.bfloat16)             # cast in-kernel (hidden under DMA)

    y = jnp.dot(w_ref[...], xb, preferred_element_type=jnp.float32)  # (Cout, TR)

    if needs_mask:  # zero padded tail columns so BN stats stay exact
        lane = jax.lax.broadcasted_iota(jnp.int32, y.shape, 1)
        valid = r_valid - pl.program_id(1) * tr
        y = jnp.where(lane < valid, y, 0.0)

    y_ref[...] = y.astype(y_ref.dtype)
    ps_ref[...] = jnp.sum(y, axis=1, keepdims=True)
    pq_ref[...] = jnp.sum(y * y, axis=1, keepdims=True)


def _bn_add_kernel(*refs, relu, proj):
    """out = [relu](y*scale+shift) + (Wp @ res | res)  -- final fused epilogue."""
    if proj:
        y_ref, sc_ref, sh_ref, r_ref, wp_ref, o_ref = refs
    else:
        y_ref, sc_ref, sh_ref, r_ref, o_ref = refs

    v = y_ref[...].astype(jnp.float32) * sc_ref[...] + sh_ref[...]
    if relu:
        v = jnp.maximum(v, 0.0)
    if proj:
        res = jnp.dot(wp_ref[...], r_ref[...].astype(jnp.bfloat16),
                      preferred_element_type=jnp.float32)
    else:
        res = r_ref[...].astype(jnp.float32)
    o_ref[...] = (v + res).astype(o_ref.dtype)


# ---------------------------------------------------------------------------
# Pallas wrappers
# ---------------------------------------------------------------------------
def conv_cf(x, w, scale=None, shift=None, *, out_dtype=jnp.bfloat16):
    """Channel-first conv-as-GEMM with fused BN-stats epilogue.

    x: (N, Cin, R) f32/bf16 (cast to bf16 in-kernel); w: (Cout, Cin) (resident).
    scale/shift: optional (Cin, 1) f32 -> fused relu(x*scale+shift) prologue.
    Returns y (N, Cout, R) in out_dtype and per-program partial (sum, sumsq)
    of shape (G, Cout, 1) taken from the f32 accumulator.
    """
    n, c_in, r = x.shape
    c_out = w.shape[0]
    wb = w.astype(jnp.bfloat16)
    prologue = scale is not None

    limit, budget = _vmem_budget()
    per_row = (c_in * (jnp.dtype(x.dtype).itemsize + (4 if prologue else 0))
               + c_out * (jnp.dtype(out_dtype).itemsize + 4))
    tr, num_r, r_pad = _pick_tr(r, per_row, budget)
    needs_mask = r_pad != r
    if needs_mask:
        x = jnp.pad(x, ((0, 0), (0, 0), (0, r_pad - r)))

    in_specs = [pl.BlockSpec((None, c_in, tr), lambda i, j: (i, 0, j)),
                pl.BlockSpec((c_out, c_in), lambda i, j: (0, 0))]   # resident W
    args = [x, wb]
    if prologue:
        in_specs += [pl.BlockSpec((c_in, 1), lambda i, j: (0, 0)),
                     pl.BlockSpec((c_in, 1), lambda i, j: (0, 0))]
        args += [scale, shift]

    g = n * num_r
    stat_spec = pl.BlockSpec((None, c_out, 1),
                             lambda i, j, nr=num_r: (i * nr + j, 0, 0))
    out_shape = (jax.ShapeDtypeStruct((n, c_out, r_pad), out_dtype),
                 jax.ShapeDtypeStruct((g, c_out, 1), jnp.float32),
                 jax.ShapeDtypeStruct((g, c_out, 1), jnp.float32))
    out_specs = (pl.BlockSpec((None, c_out, tr), lambda i, j: (i, 0, j)),
                 stat_spec, stat_spec)

    # TODO(synk): consider pipeline_mode=pl.Buffered(3) on the x/y specs for very
    #             long row grids on v7x/v6e (exposed DMA latency).
    y, ps, pq = pl.pallas_call(
        functools.partial(_conv_cf_kernel, prologue=prologue,
                          needs_mask=needs_mask, r_valid=r, tr=tr),
        out_shape=out_shape,
        grid_spec=pltpu.PrefetchScalarGridSpec(
            num_scalar_prefetch=0, grid=(n, num_r),
            in_specs=in_specs, out_specs=out_specs),
        compiler_params=pltpu.CompilerParams(
            dimension_semantics=("parallel", "parallel"),
            vmem_limit_bytes=limit),
    )(*args)
    if needs_mask:
        y = y[:, :, :r]
    return y, ps, pq


def bn_add_residual_cf(y, scale, shift, res, wp=None, *, relu=True):
    """Fused bn3-affine (+ReLU) + residual add (+ optional 1x1 projection GEMM)."""
    n, c_out, r = y.shape
    c_res = res.shape[1]
    proj = wp is not None

    limit, budget = _vmem_budget()
    per_row = c_out * (jnp.dtype(y.dtype).itemsize + 8) \
        + c_res * jnp.dtype(res.dtype).itemsize
    tr, num_r, r_pad = _pick_tr(r, per_row, budget)
    if r_pad != r:
        y = jnp.pad(y, ((0, 0), (0, 0), (0, r_pad - r)))
        res = jnp.pad(res, ((0, 0), (0, 0), (0, r_pad - r)))

    in_specs = [pl.BlockSpec((None, c_out, tr), lambda i, j: (i, 0, j)),
                pl.BlockSpec((c_out, 1), lambda i, j: (0, 0)),
                pl.BlockSpec((c_out, 1), lambda i, j: (0, 0)),
                pl.BlockSpec((None, c_res, tr), lambda i, j: (i, 0, j))]
    args = [y, scale, shift, res]
    if proj:
        in_specs.append(pl.BlockSpec((c_out, c_res), lambda i, j: (0, 0)))
        args.append(wp.astype(jnp.bfloat16))

    out = pl.pallas_call(
        functools.partial(_bn_add_kernel, relu=relu, proj=proj),
        out_shape=jax.ShapeDtypeStruct((n, c_out, r_pad), jnp.float32),
        grid_spec=pltpu.PrefetchScalarGridSpec(
            num_scalar_prefetch=0, grid=(n, num_r),
            in_specs=in_specs,
            out_specs=pl.BlockSpec((None, c_out, tr), lambda i, j: (i, 0, j))),
        compiler_params=pltpu.CompilerParams(
            dimension_semantics=("parallel", "parallel"),
            vmem_limit_bytes=limit),
    )(*args)
    return out[:, :, :r] if r_pad != r else out


# ---------------------------------------------------------------------------
# BN fold + data-movement glue (XLA): im2col for conv3x3x3, AvgPool3d
# ---------------------------------------------------------------------------
def _bn_fold(psum, psq, count, gamma, beta):
    """Per-program partial stats -> per-channel (scale, shift), training-mode BN."""
    s = jnp.sum(psum, axis=0)                         # (C, 1)
    q = jnp.sum(psq, axis=0)
    mean = s / count
    # TODO(synk): E[x^2]-mean^2 in f32 can cancel for extremely large counts; a
    #             shifted / Welford-style combine would be more robust.
    var = jnp.maximum(q / count - mean * mean, 0.0)
    scale = gamma.reshape(-1, 1) / jnp.sqrt(var + BN_EPS)
    shift = beta.reshape(-1, 1) - mean * scale
    return scale.astype(jnp.float32), shift.astype(jnp.float32)


def _im2col_cf(a, spatial, stride):
    """(N, C, D*H*W) -> bf16 patches (N, 27*C, Do*Ho*Wo); tap-major, cin-minor."""
    n, c, _ = a.shape
    d, h, w = spatial
    x = a.reshape(n, c, d, h, w)
    xp = jnp.pad(x, ((0, 0), (0, 0), (1, 1), (1, 1), (1, 1)))
    do = (d - 1) // stride + 1
    ho = (h - 1) // stride + 1
    wo = (w - 1) // stride + 1
    taps = []
    for kd in range(3):
        for kh in range(3):
            for kw in range(3):
                taps.append(xp[:, :,
                               kd:kd + stride * (do - 1) + 1:stride,
                               kh:kh + stride * (ho - 1) + 1:stride,
                               kw:kw + stride * (wo - 1) + 1:stride])
    p = jnp.stack(taps, axis=1)                        # (N, 27, C, Do, Ho, Wo)
    return p.reshape(n, 27 * c, do * ho * wo), (do, ho, wo)


def _avgpool_cf(x, spatial, s):
    """AvgPool3d(kernel=s, stride=s) on (N, C, D*H*W) (non-overlapping, floor)."""
    n, c, _ = x.shape
    d, h, w = spatial
    xr = x.reshape(n, c, d, h, w)
    do, ho, wo = d // s, h // s, w // s
    xr = xr[:, :, :do * s, :ho * s, :wo * s].reshape(n, c, do, s, ho, s, wo, s)
    return xr.mean(axis=(3, 5, 7)).reshape(n, c, do * ho * wo), (do, ho, wo)


# ---------------------------------------------------------------------------
# ResidualLayer forward
# ---------------------------------------------------------------------------
def residual_layer_forward(x_ncdhw, params, *, stride=1, activate_last=True):
    """x: (N, Cin, D, H, W) float32 -> (N, Cout, Do, Ho, Wo) float32."""
    w1, g1, b1 = params["conv1_w"], params["bn1_gamma"], params["bn1_beta"]
    w2, g2, b2 = params["conv2_w"], params["bn2_gamma"], params["bn2_beta"]
    w3, g3, b3 = params["conv3_w"], params["bn3_gamma"], params["bn3_beta"]
    wp = params.get("proj_w")

    x = x_ncdhw.astype(jnp.float32)
    n, cin, d, h, w = x.shape
    cbn, cout = w1.shape[0], w3.shape[0]
    r1 = d * h * w
    x3 = x.reshape(n, cin, r1)          # channel-first, rows on lanes (free reshape)

    # conv1 (1x1x1) + fused BN1 batch-stats epilogue
    y1, s1, q1 = conv_cf(x3, w1.reshape(cbn, cin))
    sc1, sh1 = _bn_fold(s1, q1, n * r1, g1, b1)

    # bn1+ReLU folded into the XLA im2col producer so conv2's zero spatial padding
    # applies to the *normalized* activation (matches PyTorch ordering).
    a1 = jnp.maximum(y1.astype(jnp.float32) * sc1[None] + sh1[None],
                     0.0).astype(jnp.bfloat16)
    p2, (do, ho, wo) = _im2col_cf(a1, (d, h, w), stride)
    r2 = do * ho * wo

    # conv2 (3x3x3, stride, pad=1) as GEMM + fused BN2 stats
    w2m = jnp.transpose(w2, (0, 2, 3, 4, 1)).reshape(cbn, 27 * cbn)
    y2, s2, q2 = conv_cf(p2, w2m)
    sc2, sh2 = _bn_fold(s2, q2, n * r2, g2, b2)

    # conv3 (1x1x1) with bn2+ReLU fused into the matmul prologue + BN3 stats
    y3, s3, q3 = conv_cf(y2, w3.reshape(cout, cbn), scale=sc2, shift=sh2)
    sc3, sh3 = _bn_fold(s3, q3, n * r2, g3, b3)

    # residual branch
    # TODO(synk): Dropout3d(residual) omitted (dropout_rate=0 default -> identity).
    if stride > 1:
        res, rsp = _avgpool_cf(x3, (d, h, w), stride)
        # PyTorch also fails for odd spatial dims here (conv ceil vs pool floor).
        assert rsp == (do, ho, wo), "residual/conv spatial mismatch"
    else:
        res = x3
    wpm = None if wp is None else wp.reshape(cout, cin)

    # fused: bn3 affine (+ReLU if activate_last) + [1x1 projection] + residual add
    out = bn_add_residual_cf(y3, sc3, sh3, res, wp=wpm, relu=activate_last)
    return out.reshape(n, cout, do, ho, wo)     # already NCDHW -- no transposes


# ---------------------------------------------------------------------------
# Parameters (PyTorch-default-ish initialization, BN affine params randomized)
# ---------------------------------------------------------------------------
def make_params(key, in_channels, out_channels):
    bn_ch = int(math.ceil(in_channels / 4))
    keys = jax.random.split(key, 10)

    def conv_w(k, co, ci, ksz):
        fan_in = ci * ksz ** 3
        return jax.random.normal(k, (co, ci, ksz, ksz, ksz),
                                 jnp.float32) / math.sqrt(fan_in)

    p = {
        "conv1_w": conv_w(keys[0], bn_ch, in_channels, 1),
        "bn1_gamma": 1.0 + 0.1 * jax.random.normal(keys[1], (bn_ch,), jnp.float32),
        "bn1_beta": 0.1 * jax.random.normal(keys[2], (bn_ch,), jnp.float32),
        "conv2_w": conv_w(keys[3], bn_ch, bn_ch, 3),
        "bn2_gamma": 1.0 + 0.1 * jax.random.normal(keys[4], (bn_ch,), jnp.float32),
        "bn2_beta": 0.1 * jax.random.normal(keys[5], (bn_ch,), jnp.float32),
        "conv3_w": conv_w(keys[6], out_channels, bn_ch, 1),
        "bn3_gamma": 1.0 + 0.1 * jax.random.normal(keys[7], (out_channels,),
                                                   jnp.float32),
        "bn3_beta": 0.1 * jax.random.normal(keys[8], (out_channels,), jnp.float32),
    }
    if in_channels != out_channels:
        p["proj_w"] = conv_w(keys[9], out_channels, in_channels, 1)
    return p


if __name__ == "__main__":
    key = jax.random.PRNGKey(0)
    k1, k2, k3, k4 = jax.random.split(key, 4)
    fwd = jax.jit(residual_layer_forward, static_argnames=("stride", "activate_last"))

    # Config A: stride=1, Cin != Cout  -> 1x1 projection on the residual branch.
    pA = make_params(k1, 8, 16)
    xA = jax.random.normal(k2, (2, 8, 8, 8, 8), jnp.float32)     # (N, C, D, H, W)
    outA = jax.block_until_ready(fwd(xA, pA, stride=1))
    assert outA.shape == (2, 16, 8, 8, 8), outA.shape
    assert bool(jnp.all(jnp.isfinite(outA)))

    # Config B: stride=2, Cin == Cout  -> AvgPool3d downsample on the residual.
    pB = make_params(k3, 16, 16)
    xB = jax.random.normal(k4, (2, 16, 8, 8, 8), jnp.float32)
    outB = jax.block_until_ready(fwd(xB, pB, stride=2))
    assert outB.shape == (2, 16, 4, 4, 4), outB.shape
    assert bool(jnp.all(jnp.isfinite(outB)))

    print("KERNEL_OK")
</pallas_src>

<mosaic_0001>
module attributes {stable_mosaic.version = 11 : i64} {
  func.func @_conv_cf_kernel(%arg0: i32, %arg1: i32, %arg2: memref<1x8x512xf32, #tpu.memory_space<vmem>>, %arg3: memref<2x8xbf16, #tpu.memory_space<vmem>>, %arg4: memref<1x2x512xbf16, #tpu.memory_space<vmem>>, %arg5: memref<1x2x1xf32, #tpu.memory_space<vmem>>, %arg6: memref<1x2x1xf32, #tpu.memory_space<vmem>>) attributes {dimension_semantics = [#tpu.dimension_semantics<parallel>, #tpu.dimension_semantics<parallel>], iteration_bounds = array<i64: 2, 1>, scalar_prefetch = 0 : i64, scratch_operands = 0 : i64, tpu.core_type = #tpu.core_type<tc>, window_params = [{transform_indices = @transform_0, window_bounds = array<i64: 1, 8, 512>}, {pipeline_mode = #tpu.pipeline_mode<synchronous>, transform_indices = @transform_1, window_bounds = array<i64: 2, 8>}, {transform_indices = @transform_2, window_bounds = array<i64: 1, 2, 512>}, {transform_indices = @transform_3, window_bounds = array<i64: 1, 2, 1>}, {transform_indices = @transform_4, window_bounds = array<i64: 1, 2, 1>}]} {
    %c0 = arith.constant 0 : index
    %c0_0 = arith.constant 0 : index
    %c0_1 = arith.constant 0 : index
    %0 = vector.load %arg2[%c0, %c0_0, %c0_1] : memref<1x8x512xf32, #tpu.memory_space<vmem>>, vector<1x8x512xf32>
    %1 = vector.shape_cast %0 : vector<1x8x512xf32> to vector<8x512xf32>
    %2 = arith.truncf %1 : vector<8x512xf32> to vector<8x512xbf16>
    %c0_2 = arith.constant 0 : index
    %c0_3 = arith.constant 0 : index
    %3 = vector.load %arg3[%c0_2, %c0_3] : memref<2x8xbf16, #tpu.memory_space<vmem>>, vector<2x8xbf16>
    %cst = arith.constant dense<0.000000e+00> : vector<2x512xf32>
    %4 = tpu.matmul %3, %2, %cst {dimension_numbers = #tpu.dot_dimension_numbers<[1], [0], [0], [1], [0, 0, 1, 1], [], []>} : vector<2x8xbf16>, vector<8x512xbf16>, vector<2x512xf32> -> vector<2x512xf32>
    %5 = arith.truncf %4 : vector<2x512xf32> to vector<2x512xbf16>
    %c0_4 = arith.constant 0 : index
    %c0_5 = arith.constant 0 : index
    %c0_6 = arith.constant 0 : index
    %6 = vector.load %arg4[%c0_4, %c0_5, %c0_6] : memref<1x2x512xbf16, #tpu.memory_space<vmem>>, vector<1x2x512xbf16>
    %7 = vector.shape_cast %6 : vector<1x2x512xbf16> to vector<2x512xbf16>
    %8 = vector.shape_cast %5 : vector<2x512xbf16> to vector<1x2x512xbf16>
    tpu.vector_store %arg4[%c0_4, %c0_5, %c0_6], %8 {strides = array<i32>} : memref<1x2x512xbf16, #tpu.memory_space<vmem>>, vector<1x2x512xbf16>,
    %cst_7 = arith.constant dense<0.000000e+00> : vector<2xf32>
    %9 = vector.multi_reduction <add>, %4, %cst_7 [1] : vector<2x512xf32> to vector<2xf32>
    %10 = vector.shape_cast %9 : vector<2xf32> to vector<2x1xf32>
    %c0_8 = arith.constant 0 : index
    %c0_9 = arith.constant 0 : index
    %c0_10 = arith.constant 0 : index
    %11 = vector.load %arg5[%c0_8, %c0_9, %c0_10] : memref<1x2x1xf32, #tpu.memory_space<vmem>>, vector<1x2x1xf32>
    %12 = vector.shape_cast %11 : vector<1x2x1xf32> to vector<2x1xf32>
    %13 = vector.shape_cast %10 : vector<2x1xf32> to vector<1x2x1xf32>
    tpu.vector_store %arg5[%c0_8, %c0_9, %c0_10], %13 {strides = array<i32>} : memref<1x2x1xf32, #tpu.memory_space<vmem>>, vector<1x2x1xf32>,
    %14 = arith.mulf %4, %4 : vector<2x512xf32>
    %cst_11 = arith.constant dense<0.000000e+00> : vector<2xf32>
    %15 = vector.multi_reduction <add>, %14, %cst_11 [1] : vector<2x512xf32> to vector<2xf32>
    %16 = vector.shape_cast %15 : vector<2xf32> to vector<2x1xf32>
    %c0_12 = arith.constant 0 : index
    %c0_13 = arith.constant 0 : index
    %c0_14 = arith.constant 0 : index
    %17 = vector.load %arg6[%c0_12, %c0_13, %c0_14] : memref<1x2x1xf32, #tpu.memory_space<vmem>>, vector<1x2x1xf32>
    %18 = vector.shape_cast %17 : vector<1x2x1xf32> to vector<2x1xf32>
    %19 = vector.shape_cast %16 : vector<2x1xf32> to vector<1x2x1xf32>
    tpu.vector_store %arg6[%c0_12, %c0_13, %c0_14], %19 {strides = array<i32>} : memref<1x2x1xf32, #tpu.memory_space<vmem>>, vector<1x2x1xf32>,
    return
  }
  func.func @transform_0(%arg0: i32, %arg1: i32) -> (i32, i32, i32) {
    %c0_i32 = arith.constant 0 : i32
    %c0_i32_0 = arith.constant 0 : i32
    return %arg0, %c0_i32, %arg1 : i32, i32, i32
  }
  func.func @transform_1(%arg0: i32, %arg1: i32) -> (i32, i32) {
    %c0_i32 = arith.constant 0 : i32
    %c0_i32_0 = arith.constant 0 : i32
    %c0_i32_1 = arith.constant 0 : i32
    return %c0_i32, %c0_i32_0 : i32, i32
  }
  func.func @transform_2(%arg0: i32, %arg1: i32) -> (i32, i32, i32) {
    %c0_i32 = arith.constant 0 : i32
    %c0_i32_0 = arith.constant 0 : i32
    return %arg0, %c0_i32, %arg1 : i32, i32, i32
  }
  func.func @transform_3(%arg0: i32, %arg1: i32) -> (i32, i32, i32) {
    %c1_i32 = arith.constant 1 : i32
    %0 = arith.muli %arg0, %c1_i32 : i32
    %1 = arith.addi %0, %arg1 : i32
    %c0_i32 = arith.constant 0 : i32
    %c0_i32_0 = arith.constant 0 : i32
    %c0_i32_1 = arith.constant 0 : i32
    return %1, %c0_i32, %c0_i32_0 : i32, i32, i32
  }
  func.func @transform_4(%arg0: i32, %arg1: i32) -> (i32, i32, i32) {
    %c1_i32 = arith.constant 1 : i32
    %0 = arith.muli %arg0, %c1_i32 : i32
    %1 = arith.addi %0, %arg1 : i32
    %c0_i32 = arith.constant 0 : i32
    %c0_i32_0 = arith.constant 0 : i32
    %c0_i32_1 = arith.constant 0 : i32
    return %1, %c0_i32, %c0_i32_0 : i32, i32, i32
  }
}

module attributes {stable_mosaic.version = 11 : i64} {
  func.func @_conv_cf_kernel(%arg0: i32, %arg1: i32, %arg2: memref<1x54x512xbf16, #tpu.memory_space<vmem>>, %arg3: memref<2x54xbf16, #tpu.memory_space<vmem>>, %arg4: memref<1x2x512xbf16, #tpu.memory_space<vmem>>, %arg5: memref<1x2x1xf32, #tpu.memory_space<vmem>>, %arg6: memref<1x2x1xf32, #tpu.memory_space<vmem>>) attributes {dimension_semantics = [#tpu.dimension_semantics<parallel>, #tpu.dimension_semantics<parallel>], iteration_bounds = array<i64: 2, 1>, scalar_prefetch = 0 : i64, scratch_operands = 0 : i64, tpu.core_type = #tpu.core_type<tc>, window_params = [{transform_indices = @transform_0, window_bounds = array<i64: 1, 54, 512>}, {pipeline_mode = #tpu.pipeline_mode<synchronous>, transform_indices = @transform_1, window_bounds = array<i64: 2, 54>}, {transform_indices = @transform_2, window_bounds = array<i64: 1, 2, 512>}, {transform_indices = @transform_3, window_bounds = array<i64: 1, 2, 1>}, {transform_indices = @transform_4, window_bounds = array<i64: 1, 2, 1>}]} {
    %c0 = arith.constant 0 : index
    %c0_0 = arith.constant 0 : index
    %c0_1 = arith.constant 0 : index
    %0 = vector.load %arg2[%c0, %c0_0, %c0_1] : memref<1x54x512xbf16, #tpu.memory_space<vmem>>, vector<1x54x512xbf16>
    %1 = vector.shape_cast %0 : vector<1x54x512xbf16> to vector<54x512xbf16>
    %c0_2 = arith.constant 0 : index
    %c0_3 = arith.constant 0 : index
    %2 = vector.load %arg3[%c0_2, %c0_3] : memref<2x54xbf16, #tpu.memory_space<vmem>>, vector<2x54xbf16>
    %cst = arith.constant dense<0.000000e+00> : vector<2x512xf32>
    %3 = tpu.matmul %2, %1, %cst {dimension_numbers = #tpu.dot_dimension_numbers<[1], [0], [0], [1], [0, 0, 1, 1], [], []>} : vector<2x54xbf16>, vector<54x512xbf16>, vector<2x512xf32> -> vector<2x512xf32>
    %4 = arith.truncf %3 : vector<2x512xf32> to vector<2x512xbf16>
    %c0_4 = arith.constant 0 : index
    %c0_5 = arith.constant 0 : index
    %c0_6 = arith.constant 0 : index
    %5 = vector.load %arg4[%c0_4, %c0_5, %c0_6] : memref<1x2x512xbf16, #tpu.memory_space<vmem>>, vector<1x2x512xbf16>
    %6 = vector.shape_cast %5 : vector<1x2x512xbf16> to vector<2x512xbf16>
    %7 = vector.shape_cast %4 : vector<2x512xbf16> to vector<1x2x512xbf16>
    tpu.vector_store %arg4[%c0_4, %c0_5, %c0_6], %7 {strides = array<i32>} : memref<1x2x512xbf16, #tpu.memory_space<vmem>>, vector<1x2x512xbf16>,
    %cst_7 = arith.constant dense<0.000000e+00> : vector<2xf32>
    %8 = vector.multi_reduction <add>, %3, %cst_7 [1] : vector<2x512xf32> to vector<2xf32>
    %9 = vector.shape_cast %8 : vector<2xf32> to vector<2x1xf32>
    %c0_8 = arith.constant 0 : index
    %c0_9 = arith.constant 0 : index
    %c0_10 = arith.constant 0 : index
    %10 = vector.load %arg5[%c0_8, %c0_9, %c0_10] : memref<1x2x1xf32, #tpu.memory_space<vmem>>, vector<1x2x1xf32>
    %11 = vector.shape_cast %10 : vector<1x2x1xf32> to vector<2x1xf32>
    %12 = vector.shape_cast %9 : vector<2x1xf32> to vector<1x2x1xf32>
    tpu.vector_store %arg5[%c0_8, %c0_9, %c0_10], %12 {strides = array<i32>} : memref<1x2x1xf32, #tpu.memory_space<vmem>>, vector<1x2x1xf32>,
    %13 = arith.mulf %3, %3 : vector<2x512xf32>
    %cst_11 = arith.constant dense<0.000000e+00> : vector<2xf32>
    %14 = vector.multi_reduction <add>, %13, %cst_11 [1] : vector<2x512xf32> to vector<2xf32>
    %15 = vector.shape_cast %14 : vector<2xf32> to vector<2x1xf32>
    %c0_12 = arith.constant 0 : index
    %c0_13 = arith.constant 0 : index
    %c0_14 = arith.constant 0 : index
    %16 = vector.load %arg6[%c0_12, %c0_13, %c0_14] : memref<1x2x1xf32, #tpu.memory_space<vmem>>, vector<1x2x1xf32>
    %17 = vector.shape_cast %16 : vector<1x2x1xf32> to vector<2x1xf32>
    %18 = vector.shape_cast %15 : vector<2x1xf32> to vector<1x2x1xf32>
    tpu.vector_store %arg6[%c0_12, %c0_13, %c0_14], %18 {strides = array<i32>} : memref<1x2x1xf32, #tpu.memory_space<vmem>>, vector<1x2x1xf32>,
    return
  }
  func.func @transform_0(%arg0: i32, %arg1: i32) -> (i32, i32, i32) {
    %c0_i32 = arith.constant 0 : i32
    %c0_i32_0 = arith.constant 0 : i32
    return %arg0, %c0_i32, %arg1 : i32, i32, i32
  }
  func.func @transform_1(%arg0: i32, %arg1: i32) -> (i32, i32) {
    %c0_i32 = arith.constant 0 : i32
    %c0_i32_0 = arith.constant 0 : i32
    %c0_i32_1 = arith.constant 0 : i32
    return %c0_i32, %c0_i32_0 : i32, i32
  }
  func.func @transform_2(%arg0: i32, %arg1: i32) -> (i32, i32, i32) {
    %c0_i32 = arith.constant 0 : i32
    %c0_i32_0 = arith.constant 0 : i32
    return %arg0, %c0_i32, %arg1 : i32, i32, i32
  }
  func.func @transform_3(%arg0: i32, %arg1: i32) -> (i32, i32, i32) {
    %c1_i32 = arith.constant 1 : i32
    %0 = arith.muli %arg0, %c1_i32 : i32
    %1 = arith.addi %0, %arg1 : i32
    %c0_i32 = arith.constant 0 : i32
    %c0_i32_0 = arith.constant 0 : i32
    %c0_i32_1 = arith.constant 0 : i32
    return %1, %c0_i32, %c0_i32_0 : i32, i32, i32
  }
  func.func @transform_4(%arg0: i32, %arg1: i32) -> (i32, i32, i32) {
    %c1_i32 = arith.constant 1 : i32
    %0 = arith.muli %arg0, %c1_i32 : i32
    %1 = arith.addi %0, %arg1 : i32
    %c0_i32 = arith.constant 0 : i32
    %c0_i32_0 = arith.constant 0 : i32
    %c0_i32_1 = arith.constant 0 : i32
    return %1, %c0_i32, %c0_i32_0 : i32, i32, i32
  }
}

module attributes {stable_mosaic.version = 11 : i64} {
  func.func @_conv_cf_kernel(%arg0: i32, %arg1: i32, %arg2: memref<1x2x512xbf16, #tpu.memory_space<vmem>>, %arg3: memref<16x2xbf16, #tpu.memory_space<vmem>>, %arg4: memref<2x1xf32, #tpu.memory_space<vmem>>, %arg5: memref<2x1xf32, #tpu.memory_space<vmem>>, %arg6: memref<1x16x512xbf16, #tpu.memory_space<vmem>>, %arg7: memref<1x16x1xf32, #tpu.memory_space<vmem>>, %arg8: memref<1x16x1xf32, #tpu.memory_space<vmem>>) attributes {dimension_semantics = [#tpu.dimension_semantics<parallel>, #tpu.dimension_semantics<parallel>], iteration_bounds = array<i64: 2, 1>, scalar_prefetch = 0 : i64, scratch_operands = 0 : i64, tpu.core_type = #tpu.core_type<tc>, window_params = [{transform_indices = @transform_0, window_bounds = array<i64: 1, 2, 512>}, {pipeline_mode = #tpu.pipeline_mode<synchronous>, transform_indices = @transform_1, window_bounds = array<i64: 16, 2>}, {pipeline_mode = #tpu.pipeline_mode<synchronous>, transform_indices = @transform_2, window_bounds = array<i64: 2, 1>}, {pipeline_mode = #tpu.pipeline_mode<synchronous>, transform_indices = @transform_3, window_bounds = array<i64: 2, 1>}, {transform_indices = @transform_4, window_bounds = array<i64: 1, 16, 512>}, {transform_indices = @transform_5, window_bounds = array<i64: 1, 16, 1>}, {transform_indices = @transform_6, window_bounds = array<i64: 1, 16, 1>}]} {
    %c0 = arith.constant 0 : index
    %c0_0 = arith.constant 0 : index
    %c0_1 = arith.constant 0 : index
    %0 = vector.load %arg2[%c0, %c0_0, %c0_1] : memref<1x2x512xbf16, #tpu.memory_space<vmem>>, vector<1x2x512xbf16>
    %1 = vector.shape_cast %0 : vector<1x2x512xbf16> to vector<2x512xbf16>
    %2 = arith.extf %1 : vector<2x512xbf16> to vector<2x512xf32>
    %c0_2 = arith.constant 0 : index
    %c0_3 = arith.constant 0 : index
    %3 = vector.load %arg4[%c0_2, %c0_3] : memref<2x1xf32, #tpu.memory_space<vmem>>, vector<2x1xf32>
    %4 = vector.broadcast %3 : vector<2x1xf32> to vector<2x512xf32>
    %5 = arith.mulf %2, %4 : vector<2x512xf32>
    %c0_4 = arith.constant 0 : index
    %c0_5 = arith.constant 0 : index
    %6 = vector.load %arg5[%c0_4, %c0_5] : memref<2x1xf32, #tpu.memory_space<vmem>>, vector<2x1xf32>
    %7 = vector.broadcast %6 : vector<2x1xf32> to vector<2x512xf32>
    %8 = arith.addf %5, %7 : vector<2x512xf32>
    %cst = arith.constant 0.000000e+00 : f32
    %9 = vector.broadcast %cst : f32 to vector<2x512xf32>
    %10 = arith.maximumf %8, %9 : vector<2x512xf32>
    %11 = arith.truncf %10 : vector<2x512xf32> to vector<2x512xbf16>
    %c0_6 = arith.constant 0 : index
    %c0_7 = arith.constant 0 : index
    %12 = vector.load %arg3[%c0_6, %c0_7] : memref<16x2xbf16, #tpu.memory_space<vmem>>, vector<16x2xbf16>
    %cst_8 = arith.constant dense<0.000000e+00> : vector<16x512xf32>
    %13 = tpu.matmul %12, %11, %cst_8 {dimension_numbers = #tpu.dot_dimension_numbers<[1], [0], [0], [1], [0, 0, 1, 1], [], []>} : vector<16x2xbf16>, vector<2x512xbf16>, vector<16x512xf32> -> vector<16x512xf32>
    %14 = arith.truncf %13 : vector<16x512xf32> to vector<16x512xbf16>
    %c0_9 = arith.constant 0 : index
    %c0_10 = arith.constant 0 : index
    %c0_11 = arith.constant 0 : index
    %15 = vector.load %arg6[%c0_9, %c0_10, %c0_11] : memref<1x16x512xbf16, #tpu.memory_space<vmem>>, vector<1x16x512xbf16>
    %16 = vector.shape_cast %15 : vector<1x16x512xbf16> to vector<16x512xbf16>
    %17 = vector.shape_cast %14 : vector<16x512xbf16> to vector<1x16x512xbf16>
    tpu.vector_store %arg6[%c0_9, %c0_10, %c0_11], %17 {strides = array<i32>} : memref<1x16x512xbf16, #tpu.memory_space<vmem>>, vector<1x16x512xbf16>,
    %cst_12 = arith.constant dense<0.000000e+00> : vector<16xf32>
    %18 = vector.multi_reduction <add>, %13, %cst_12 [1] : vector<16x512xf32> to vector<16xf32>
    %19 = vector.shape_cast %18 : vector<16xf32> to vector<16x1xf32>
    %c0_13 = arith.constant 0 : index
    %c0_14 = arith.constant 0 : index
    %c0_15 = arith.constant 0 : index
    %20 = vector.load %arg7[%c0_13, %c0_14, %c0_15] : memref<1x16x1xf32, #tpu.memory_space<vmem>>, vector<1x16x1xf32>
    %21 = vector.shape_cast %20 : vector<1x16x1xf32> to vector<16x1xf32>
    %22 = vector.shape_cast %19 : vector<16x1xf32> to vector<1x16x1xf32>
    tpu.vector_store %arg7[%c0_13, %c0_14, %c0_15], %22 {strides = array<i32>} : memref<1x16x1xf32, #tpu.memory_space<vmem>>, vector<1x16x1xf32>,
    %23 = arith.mulf %13, %13 : vector<16x512xf32>
    %cst_16 = arith.constant dense<0.000000e+00> : vector<16xf32>
    %24 = vector.multi_reduction <add>, %23, %cst_16 [1] : vector<16x512xf32> to vector<16xf32>
    %25 = vector.shape_cast %24 : vector<16xf32> to vector<16x1xf32>
    %c0_17 = arith.constant 0 : index
    %c0_18 = arith.constant 0 : index
    %c0_19 = arith.constant 0 : index
    %26 = vector.load %arg8[%c0_17, %c0_18, %c0_19] : memref<1x16x1xf32, #tpu.memory_space<vmem>>, vector<1x16x1xf32>
    %27 = vector.shape_cast %26 : vector<1x16x1xf32> to vector<16x1xf32>
    %28 = vector.shape_cast %25 : vector<16x1xf32> to vector<1x16x1xf32>
    tpu.vector_store %arg8[%c0_17, %c0_18, %c0_19], %28 {strides = array<i32>} : memref<1x16x1xf32, #tpu.memory_space<vmem>>, vector<1x16x1xf32>,
    return
  }
  func.func @transform_0(%arg0: i32, %arg1: i32) -> (i32, i32, i32) {
    %c0_i32 = arith.constant 0 : i32
    %c0_i32_0 = arith.constant 0 : i32
    return %arg0, %c0_i32, %arg1 : i32, i32, i32
  }
  func.func @transform_1(%arg0: i32, %arg1: i32) -> (i32, i32) {
    %c0_i32 = arith.constant 0 : i32
    %c0_i32_0 = arith.constant 0 : i32
    %c0_i32_1 = arith.constant 0 : i32
    return %c0_i32, %c0_i32_0 : i32, i32
  }
  func.func @transform_2(%arg0: i32, %arg1: i32) -> (i32, i32) {
    %c0_i32 = arith.constant 0 : i32
    %c0_i32_0 = arith.constant 0 : i32
    %c0_i32_1 = arith.constant 0 : i32
    return %c0_i32, %c0_i32_0 : i32, i32
  }
  func.func @transform_3(%arg0: i32, %arg1: i32) -> (i32, i32) {
    %c0_i32 = arith.constant 0 : i32
    %c0_i32_0 = arith.constant 0 : i32
    %c0_i32_1 = arith.constant 0 : i32
    return %c0_i32, %c0_i32_0 : i32, i32
  }
  func.func @transform_4(%arg0: i32, %arg1: i32) -> (i32, i32, i32) {
    %c0_i32 = arith.constant 0 : i32
    %c0_i32_0 = arith.constant 0 : i32
    return %arg0, %c0_i32, %arg1 : i32, i32, i32
  }
  func.func @transform_5(%arg0: i32, %arg1: i32) -> (i32, i32, i32) {
    %c1_i32 = arith.constant 1 : i32
    %0 = arith.muli %arg0, %c1_i32 : i32
    %1 = arith.addi %0, %arg1 : i32
    %c0_i32 = arith.constant 0 : i32
    %c0_i32_0 = arith.constant 0 : i32
    %c0_i32_1 = arith.constant 0 : i32
    return %1, %c0_i32, %c0_i32_0 : i32, i32, i32
  }
  func.func @transform_6(%arg0: i32, %arg1: i32) -> (i32, i32, i32) {
    %c1_i32 = arith.constant 1 : i32
    %0 = arith.muli %arg0, %c1_i32 : i32
    %1 = arith.addi %0, %arg1 : i32
    %c0_i32 = arith.constant 0 : i32
    %c0_i32_0 = arith.constant 0 : i32
    %c0_i32_1 = arith.constant 0 : i32
    return %1, %c0_i32, %c0_i32_0 : i32, i32, i32
  }
}

module attributes {stable_mosaic.version = 11 : i64} {
  func.func @_bn_add_kernel(%arg0: i32, %arg1: i32, %arg2: memref<1x16x512xbf16, #tpu.memory_space<vmem>>, %arg3: memref<16x1xf32, #tpu.memory_space<vmem>>, %arg4: memref<16x1xf32, #tpu.memory_space<vmem>>, %arg5: memref<1x8x512xf32, #tpu.memory_space<vmem>>, %arg6: memref<16x8xbf16, #tpu.memory_space<vmem>>, %arg7: memref<1x16x512xf32, #tpu.memory_space<vmem>>) attributes {dimension_semantics = [#tpu.dimension_semantics<parallel>, #tpu.dimension_semantics<parallel>], iteration_bounds = array<i64: 2, 1>, scalar_prefetch = 0 : i64, scratch_operands = 0 : i64, tpu.core_type = #tpu.core_type<tc>, window_params = [{transform_indices = @transform_0, window_bounds = array<i64: 1, 16, 512>}, {pipeline_mode = #tpu.pipeline_mode<synchronous>, transform_indices = @transform_1, window_bounds = array<i64: 16, 1>}, {pipeline_mode = #tpu.pipeline_mode<synchronous>, transform_indices = @transform_2, window_bounds = array<i64: 16, 1>}, {transform_indices = @transform_3, window_bounds = array<i64: 1, 8, 512>}, {pipeline_mode = #tpu.pipeline_mode<synchronous>, transform_indices = @transform_4, window_bounds = array<i64: 16, 8>}, {transform_indices = @transform_5, window_bounds = array<i64: 1, 16, 512>}]} {
    %c0 = arith.constant 0 : index
    %c0_0 = arith.constant 0 : index
    %c0_1 = arith.constant 0 : index
    %0 = vector.load %arg2[%c0, %c0_0, %c0_1] : memref<1x16x512xbf16, #tpu.memory_space<vmem>>, vector<1x16x512xbf16>
    %1 = vector.shape_cast %0 : vector<1x16x512xbf16> to vector<16x512xbf16>
    %2 = arith.extf %1 : vector<16x512xbf16> to vector<16x512xf32>
    %c0_2 = arith.constant 0 : index
    %c0_3 = arith.constant 0 : index
    %3 = vector.load %arg3[%c0_2, %c0_3] : memref<16x1xf32, #tpu.memory_space<vmem>>, vector<16x1xf32>
    %4 = vector.broadcast %3 : vector<16x1xf32> to vector<16x512xf32>
    %5 = arith.mulf %2, %4 : vector<16x512xf32>
    %c0_4 = arith.constant 0 : index
    %c0_5 = arith.constant 0 : index
    %6 = vector.load %arg4[%c0_4, %c0_5] : memref<16x1xf32, #tpu.memory_space<vmem>>, vector<16x1xf32>
    %7 = vector.broadcast %6 : vector<16x1xf32> to vector<16x512xf32>
    %8 = arith.addf %5, %7 : vector<16x512xf32>
    %cst = arith.constant 0.000000e+00 : f32
    %9 = vector.broadcast %cst : f32 to vector<16x512xf32>
    %10 = arith.maximumf %8, %9 : vector<16x512xf32>
    %c0_6 = arith.constant 0 : index
    %c0_7 = arith.constant 0 : index
    %11 = vector.load %arg6[%c0_6, %c0_7] : memref<16x8xbf16, #tpu.memory_space<vmem>>, vector<16x8xbf16>
    %c0_8 = arith.constant 0 : index
    %c0_9 = arith.constant 0 : index
    %c0_10 = arith.constant 0 : index
    %12 = vector.load %arg5[%c0_8, %c0_9, %c0_10] : memref<1x8x512xf32, #tpu.memory_space<vmem>>, vector<1x8x512xf32>
    %13 = vector.shape_cast %12 : vector<1x8x512xf32> to vector<8x512xf32>
    %14 = arith.truncf %13 : vector<8x512xf32> to vector<8x512xbf16>
    %cst_11 = arith.constant dense<0.000000e+00> : vector<16x512xf32>
    %15 = tpu.matmul %11, %14, %cst_11 {dimension_numbers = #tpu.dot_dimension_numbers<[1], [0], [0], [1], [0, 0, 1, 1], [], []>} : vector<16x8xbf16>, vector<8x512xbf16>, vector<16x512xf32> -> vector<16x512xf32>
    %16 = arith.addf %10, %15 : vector<16x512xf32>
    %c0_12 = arith.constant 0 : index
    %c0_13 = arith.constant 0 : index
    %c0_14 = arith.constant 0 : index
    %17 = vector.load %arg7[%c0_12, %c0_13, %c0_14] : memref<1x16x512xf32, #tpu.memory_space<vmem>>, vector<1x16x512xf32>
    %18 = vector.shape_cast %17 : vector<1x16x512xf32> to vector<16x512xf32>
    %19 = vector.shape_cast %16 : vector<16x512xf32> to vector<1x16x512xf32>
    tpu.vector_store %arg7[%c0_12, %c0_13, %c0_14], %19 {strides = array<i32>} : memref<1x16x512xf32, #tpu.memory_space<vmem>>, vector<1x16x512xf32>,
    return
  }
  func.func @transform_0(%arg0: i32, %arg1: i32) -> (i32, i32, i32) {
    %c0_i32 = arith.constant 0 : i32
    %c0_i32_0 = arith.constant 0 : i32
    return %arg0, %c0_i32, %arg1 : i32, i32, i32
  }
  func.func @transform_1(%arg0: i32, %arg1: i32) -> (i32, i32) {
    %c0_i32 = arith.constant 0 : i32
    %c0_i32_0 = arith.constant 0 : i32
    %c0_i32_1 = arith.constant 0 : i32
    return %c0_i32, %c0_i32_0 : i32, i32
  }
  func.func @transform_2(%arg0: i32, %arg1: i32) -> (i32, i32) {
    %c0_i32 = arith.constant 0 : i32
    %c0_i32_0 = arith.constant 0 : i32
    %c0_i32_1 = arith.constant 0 : i32
    return %c0_i32, %c0_i32_0 : i32, i32
  }
  func.func @transform_3(%arg0: i32, %arg1: i32) -> (i32, i32, i32) {
    %c0_i32 = arith.constant 0 : i32
    %c0_i32_0 = arith.constant 0 : i32
    return %arg0, %c0_i32, %arg1 : i32, i32, i32
  }
  func.func @transform_4(%arg0: i32, %arg1: i32) -> (i32, i32) {
    %c0_i32 = arith.constant 0 : i32
    %c0_i32_0 = arith.constant 0 : i32
    %c0_i32_1 = arith.constant 0 : i32
    return %c0_i32, %c0_i32_0 : i32, i32
  }
  func.func @transform_5(%arg0: i32, %arg1: i32) -> (i32, i32, i32) {
    %c0_i32 = arith.constant 0 : i32
    %c0_i32_0 = arith.constant 0 : i32
    return %arg0, %c0_i32, %arg1 : i32, i32, i32
  }
}

</mosaic_0001>

<bundles_post_ra>
// kernel: residual_layer_forward.4
= control target key start
LH: loop header
LB: loop body
LE: loop exit
PB: predicated region body
PF: predicated region fallthrough
CT: control target
= control target key end

     0   :  { %s681_s15 = smov 0   ;;  %s683_s16 = smov 0   ;;  %s736_s0 = inlined_call_operand.vmem [shape: f32[2,8,512], index: 0, kind: input, shape index: {}]   ;;  %s737_s1 = inlined_call_operand.vmem [shape: bf16[2,8], index: 1, kind: input, shape index: {}]   ;;  %s738_s2 = inlined_call_operand.vmem [shape: bf16[2,2,512], index: 2, kind: output, shape index: {0}]   ;;  %s739_s3 = inlined_call_operand.vmem [shape: f32[2,2,1], index: 3, kind: output, shape index: {1}]   ;;  %s740_s4 = inlined_call_operand.vmem [shape: f32[2,2,1], index: 4, kind: output, shape index: {2}]  }
   0x1   :  { %s685_s17 = smov 0  }
   0x2 LB: > { %s27_s18 = sadd.s32 1, %s648_s16  ;;  %p588_p0 = scmp.ge.s32.totalorder %s652_s17, 1  ;;  %s652_s17 = sphi %s685_s17, %s15_s17   ;;  %s648_s16 = sphi %s683_s16, %s742_s16   ;;  %s644_s15 = sphi %s681_s15, %s741_s15  }
   0x3   : > { %p29_p1 = scmp.ge.s32.totalorder %s27_s18, 2  ;;  %p192_p2 = scmp.lt.s32.totalorder %s652_s17, 3 }
   0x5   : > { %s744_s18 = smov (%p29_p1, %s27_s18), 0  ;;  %p193_p3 = pnand %p588_p0, %p192_p2 }
   0x6   : > { %p236_p4 = scmp.lt.s32.totalorder (!%p193_p3), %s644_s15, 1  ;;  %v654_v0 = vmov (!%p193_p3), 0   ;;  %vm280_vm0 = vcmask (!%p193_p3), 1043456   ;;  %v275_v11 = vld [vmem:[%s737_s1] sm:$0x1] (!%p193_p3)  ;;  %vm276_vm1 = vcmask (!%p193_p3), 64512   ;;  %v388_v14 = vlaneseq (!%p193_p3) }
   0x7   : > { %196 = sbr.rel (%p193_p3) target bundleno = 391 (0x187), region = 28  ;;  %325 = vmatprep.mubr.bf16.mxu0 (!%p193_p3), %v654_v0  ;;  %366 = vmatprep.mubr.bf16.mxu1 (!%p193_p3), %v654_v0  ;;  %v655_v12 = vmov (!%p193_p3), 1966171168   ;;  %vm409_vm2 = vcmask (!%p193_p3), 1041408   ;;  %vm419_vm3 = vcmask (!%p193_p3), 1024  }
   0x8   : > { %v386_v13 = vunpack.c.l.s4 (!%p193_p3), %v655_v12  ;;  %v389_v16 = vshrl.u32 (!%p193_p3), %v388_v14, 7 }
   0xa   : > { %v387_v15 = vunpack.c.0.s8 (!%p193_p3), %v386_v13 }
   0xc   : > { %v390_v18 = vsub.s32 (!%p193_p3), %v387_v15, %v389_v16 }
   0xe   : > { %s746_s15 = smov (!%p236_p4, %s644_s15), 1 }
   0xf   : > { %s603_s19 = sshll.u32 %s746_s15, 5  ;;  %s591_s25 = sshll.u32 %s746_s15, 2 }
  0x10   : > { %s243_s22 = scalar_lea.vmem %s736_s0, %s603_s19  ;;  %s252_s28 = scalar_lea.vmem %s738_s2, %s591_s25 }
  0x11   : > { %v268_v1 = vld [vmem:[%s243_s22 + $0x8] sm:$0xff]  ;;  %v270_v2 = vld [vmem:[%s243_s22 + $0x18] sm:$0xff]  ;;  %v267_v3 = vld [vmem:[%s243_s22] sm:$0xff]  ;;  %s592_s29 = sshll.u32 %s746_s15, 1 }
  0x12   : > { %v272_v4 = vpack.c.bf16 %v268_v1, %v268_v1  ;;  %v274_v5 = vpack.c.bf16 %v270_v2, %v270_v2  ;;  %v271_v6 = vpack.c.bf16 %v267_v3, %v267_v3  ;;  %v269_v7 = vld [vmem:[%s243_s22 + $0x10] sm:$0xff]  ;;  %s258_s6 = scalar_lea.vmem %s739_s3, %s592_s29  ;;  %s264_s9 = scalar_lea.vmem %s740_s4, %s592_s29 }
  0x13   : > { %v273_v8 = vpack.c.bf16 %v269_v7, %v269_v7 }
  0x14   : > { %594 = vmatprep.subr.msk.bf16.mxu0 %vm280_vm0, %v272_v4  ;;  %596 = vmatprep.subr.msk.bf16.mxu1 %vm280_vm0, %v274_v5  ;;  %v282_v9 = vsel %vm280_vm0, %v271_v6, 0 }
  0x15   : > { %294 = vmatpush1.bf16.msra.mxu0 %v282_v9  ;;  %v288_v10 = vsel %vm280_vm0, %v273_v8, 0 }
  0x16   : > { %335 = vmatpush1.bf16.msra.mxu1 %v288_v10 }
  0x18   : > { %595 = vmatmul.mubr.msk.bf16.vlgmr.msra.gmra.mrb[0].mxu0 %vm276_vm1, %v275_v11 }
  0x19   : > { %597 = vmatmul.mubr.msk.bf16.vlgmr.msra.gmra.mrb[0].mxu1 %vm276_vm1, %v275_v11 }
  0xeb   : > { %v327_v17 = vpop.f32.mrb[0].mxu0 }
  0xec   : > { %v410_v19 = vsel %vm409_vm2, %v327_v17, 0.0  ;;  %v421_v20 = vmul.f32 %v327_v17, %v327_v17  ;;  %v368_v21 = vpop.f32.mrb[0].mxu1  ;;  %v329_v22 = vpop.f32.mrb[1].mxu0 }
  0xed   : > { %v423_v23 = vmul.f32 %v368_v21, %v368_v21  ;;  %v598_v24 = vpack.c.bf16 %v329_v22, %v327_v17  ;;  %v411_v25 = vsel %vm409_vm2, %v329_v22, 0.0  ;;  %v422_v26 = vmul.f32 %v329_v22, %v329_v22  ;;  %v370_v27 = vpop.f32.mrb[1].mxu1  ;;  %v331_v28 = vpop.f32.mrb[2].mxu0 }
  0xee   : > { %v425_v29 = vsel %vm409_vm2, %v421_v20, 0.0  ;;  %v599_v30 = vpack.c.bf16 %v370_v27, %v368_v21  ;;  %v372_v31 = vpop.f32.mrb[2].mxu1  ;;  %v332_v32 = vpop.f32.mrb[3].mxu0  ;;  %v412_v33 = vadd.f32 %v411_v25, %v410_v19  ;;  %v424_v36 = vmul.f32 %v370_v27, %v370_v27 }
  0xef   : > { %v391_v34 = vrot.slane %v598_v24, %v390_v18  ;;  %v426_v35 = vsel %vm409_vm2, %v422_v26, 0.0  ;;  %v373_v37 = vpop.f32.mrb[3].mxu1  ;;  %v413_v38 = vsel %vm409_vm2, %v368_v21, 0.0  ;;  %v428_v42 = vsel %vm409_vm2, %v423_v23, 0.0 }
  0xf0   : > { %v398_v39 = vrot.slane %v599_v30, %v390_v18  ;;  %v414_v40 = vadd.f32 %v413_v38, %v412_v33  ;;  %v427_v41 = vadd.f32 %v426_v35, %v425_v29  ;;  %v415_v43 = vsel %vm409_vm2, %v370_v27, 0.0 }
  0xf1   : > { %v430_v47 = vsel %vm409_vm2, %v424_v36, 0.0 }
  0xf2   : > { %v399_v44 = vcombine.low %v391_v34, %v398_v39  ;;  %v416_v45 = vadd.f32 %v415_v43, %v414_v40  ;;  %v429_v46 = vadd.f32 %v428_v42, %v427_v41 }
  0xf4   : > { %600 = vst.sshfl [vmem:[%s252_s28] sm:$0x55 pattern:$0x73625140] %v399_v44  ;;  %417 = vadd.xlane.f32.xlu0 %v416_v45  ;;  %v431_v48 = vadd.f32 %v430_v47, %v429_v46 }
  0xf8   : > { %432 = vadd.xlane.f32.xlu0 %v431_v48 }
 0x181   : > { %v418_v49 = vpop.xlane.xlu0 %417 }
 0x182   : > { %420 = vst.msk [vmem:[%s258_s6] sm:$0x3] %vm419_vm3, %v418_v49 }
 0x185   : > { %v433_v50 = vpop.xlane.xlu0 %432 }
 0x186   : > { %434 = vst.msk [vmem:[%s264_s9] sm:$0x3] %vm419_vm3, %v433_v50 }
 0x187 PF: > { %s15_s17 = sadd.s32 1, %s652_s17   ;;  %s741_s15 = smov %s648_s16 }
 0x188   : > { %p12_p5 = scmp.ge.s32.totalorder %s15_s17, 4   ;;  %s742_s16 = smov %s744_s18 }
 0x18a   :  { %14 = sbr.rel (!%p12_p5) target bundleno = 2 (0x2), region = 82 }

// kernel: residual_layer_forward.5
= control target key start
LH: loop header
LB: loop body
LE: loop exit
PB: predicated region body
PF: predicated region fallthrough
CT: control target
= control target key end

     0   :  { %s794_s15 = smov 0   ;;  %s796_s16 = smov 0   ;;  %s849_s0 = inlined_call_operand.vmem [shape: bf16[2,54,512], index: 0, kind: input, shape index: {}]   ;;  %s850_s1 = inlined_call_operand.vmem [shape: bf16[2,54], index: 1, kind: input, shape index: {}]   ;;  %s851_s2 = inlined_call_operand.vmem [shape: bf16[2,2,512], index: 2, kind: output, shape index: {0}]   ;;  %s852_s3 = inlined_call_operand.vmem [shape: f32[2,2,1], index: 3, kind: output, shape index: {1}]   ;;  %s853_s4 = inlined_call_operand.vmem [shape: f32[2,2,1], index: 4, kind: output, shape index: {2}]  }
   0x1   :  { %s798_s17 = smov 0  }
   0x2 LB: > { %s27_s18 = sadd.s32 1, %s761_s16  ;;  %p664_p0 = scmp.ge.s32.totalorder %s765_s17, 1  ;;  %s765_s17 = sphi %s798_s17, %s15_s17   ;;  %s761_s16 = sphi %s796_s16, %s855_s16   ;;  %s757_s15 = sphi %s794_s15, %s854_s15  }
   0x3   : > { %p29_p1 = scmp.ge.s32.totalorder %s27_s18, 2  ;;  %p192_p2 = scmp.lt.s32.totalorder %s765_s17, 3 }
   0x5   : > { %s857_s18 = smov (%p29_p1, %s27_s18), 0  ;;  %p193_p3 = pnand %p664_p0, %p192_p2 }
   0x6   : > { %p236_p4 = scmp.lt.s32.totalorder (!%p193_p3), %s757_s15, 1  ;;  %v767_v0 = vmov (!%p193_p3), 0   ;;  %vm356_vm0 = vcmask (!%p193_p3), 1042432   ;;  %v281_v21 = vld [vmem:[%s850_s1] sm:$0x1] (!%p193_p3)  ;;  %vm352_vm1 = vcmask (!%p193_p3), 441344   ;;  %v464_v24 = vlaneseq (!%p193_p3) }
   0x7   : > { %196 = sbr.rel (%p193_p3) target bundleno = 402 (0x192), region = 28  ;;  %401 = vmatprep.mubr.bf16.mxu0 (!%p193_p3), %v767_v0  ;;  %442 = vmatprep.mubr.bf16.mxu1 (!%p193_p3), %v767_v0  ;;  %v768_v22 = vmov (!%p193_p3), 1966171168   ;;  %vm485_vm2 = vcmask (!%p193_p3), 1041408   ;;  %vm495_vm3 = vcmask (!%p193_p3), 1024  }
   0x8   : > { %v462_v23 = vunpack.c.l.s4 (!%p193_p3), %v768_v22  ;;  %v465_v26 = vshrl.u32 (!%p193_p3), %v464_v24, 7 }
   0xa   : > { %v463_v25 = vunpack.c.0.s8 (!%p193_p3), %v462_v23 }
   0xc   : > { %v466_v29 = vsub.s32 (!%p193_p3), %v463_v25, %v465_v26 }
   0xe   : > { %s859_s15 = smov (!%p236_p4, %s757_s15), 1 }
   0xf   : > { %s694_s19 = smul.u32 112, %s859_s15  ;;  %s666_s25 = sshll.u32 %s859_s15, 2 }
  0x10   : > { %s252_s28 = scalar_lea.vmem %s851_s2, %s666_s25  ;;  %s667_s29 = sshll.u32 %s859_s15, 1 }
  0x11   : > { %s243_s22 = scalar_lea.vmem %s849_s0, %s694_s19  ;;  %s258_s6 = scalar_lea.vmem %s852_s3, %s667_s29 }
  0x12   : > { %v721_v1 = vld [vmem:[%s243_s22 + $0x4] ss:$16 sps:$4 sm:$0xff]   ;;  %v723_v2 = vld [vmem:[%s243_s22 + $0xc] ss:$16 sps:$4 sm:$0xff]   ;;  %v725_v3 = vld [vmem:[%s243_s22] ss:$16 sps:$4 sm:$0xff]   ;;  %s264_s9 = scalar_lea.vmem %s853_s4, %s667_s29 }
  0x13   : > { %369 = vmatprep.subr.bf16.mxu0 %v721_v1  ;;  %v726_v4 = vld [vmem:[%s243_s22 + $0x8] ss:$16 sps:$4 sm:$0xff]   ;;  %410 = vmatprep.subr.bf16.mxu1 %v723_v2  ;;  %v727_v5 = vld [vmem:[%s243_s22 + $0x24] ss:$16 sps:$4 sm:$0xff]   ;;  %v729_v6 = vld [vmem:[%s243_s22 + $0x2c] ss:$16 sps:$4 sm:$0xff]  }
  0x14   : > { %370 = vmatpush1.bf16.msra.mxu0 %v725_v3  ;;  %411 = vmatpush1.bf16.msra.mxu1 %v726_v4  ;;  %v731_v7 = vld [vmem:[%s243_s22 + $0x20] ss:$16 sps:$4 sm:$0xff]   ;;  %v732_v8 = vld [vmem:[%s243_s22 + $0x28] ss:$16 sps:$4 sm:$0xff]   ;;  %v733_v9 = vld [vmem:[%s243_s22 + $0x44] ss:$16 sps:$4 sm:$0xff]  }
  0x15   : > { %371 = vmatprep.subr.bf16.mxu0 %v727_v5  ;;  %412 = vmatprep.subr.bf16.mxu1 %v729_v6  ;;  %v735_v10 = vld [vmem:[%s243_s22 + $0x4c] ss:$16 sps:$4 sm:$0xff]   ;;  %v737_v11 = vld [vmem:[%s243_s22 + $0x40] ss:$16 sps:$4 sm:$0xff]   ;;  %v738_v12 = vld [vmem:[%s243_s22 + $0x48] ss:$16 sps:$4 sm:$0xff]  }
  0x16   : > { %v279_v13 = vld [vmem:[%s243_s22 + $0x60] sm:$0x77]  ;;  %v280_v14 = vld [vmem:[%s243_s22 + $0x68] sm:$0x77] }
  0x17   : > { %v682_v15 = vcombine.high %v279_v13, %v279_v13  ;;  %v684_v16 = vcombine.high %v280_v14, %v280_v14  ;;  %v681_v17 = vcombine.low %v279_v13, %v279_v13  ;;  %v683_v18 = vcombine.low %v280_v14, %v280_v14 }
  0x18   : > { %372 = vmatpush1.bf16.msra.mxu0 %v731_v7  ;;  %413 = vmatpush1.bf16.msra.mxu1 %v732_v8 }
  0x19   : > { %373 = vmatprep.subr.bf16.mxu0 %v733_v9  ;;  %414 = vmatprep.subr.bf16.mxu1 %v735_v10  ;;  %v358_v19 = vsel %vm356_vm0, %v681_v17, 0  ;;  %v364_v20 = vsel %vm356_vm0, %v683_v18, 0 }
  0x1c   : > { %374 = vmatpush1.bf16.msra.mxu0 %v737_v11  ;;  %415 = vmatpush1.bf16.msra.mxu1 %v738_v12 }
  0x1d   : > { %685 = vmatprep.subr.msk.bf16.mxu0 %vm356_vm0, %v682_v15  ;;  %687 = vmatprep.subr.msk.bf16.mxu1 %vm356_vm0, %v684_v16 }
  0x20   : > { %376 = vmatpush1.bf16.msra.mxu0 %v358_v19  ;;  %417 = vmatpush1.bf16.msra.mxu1 %v364_v20 }
  0x23   : > { %686 = vmatmul.mubr.msk.bf16.vlgmr.msra.gmra.mrb[0].mxu0 %vm352_vm1, %v281_v21  ;;  %688 = vmatmul.mubr.msk.bf16.vlgmr.msra.gmra.mrb[0].mxu1 %vm352_vm1, %v281_v21 }
  0xf6   : > { %v403_v27 = vpop.f32.mrb[0].mxu0  ;;  %v444_v28 = vpop.f32.mrb[0].mxu1 }
  0xf7   : > { %v486_v30 = vsel %vm485_vm2, %v403_v27, 0.0  ;;  %v497_v31 = vmul.f32 %v403_v27, %v403_v27  ;;  %v499_v32 = vmul.f32 %v444_v28, %v444_v28  ;;  %v405_v33 = vpop.f32.mrb[1].mxu0  ;;  %v446_v34 = vpop.f32.mrb[1].mxu1  ;;  %v489_v35 = vsel %vm485_vm2, %v444_v28, 0.0 }
  0xf8   : > { %v689_v36 = vpack.c.bf16 %v405_v33, %v403_v27  ;;  %v487_v37 = vsel %vm485_vm2, %v405_v33, 0.0  ;;  %v498_v38 = vmul.f32 %v405_v33, %v405_v33  ;;  %v690_v39 = vpack.c.bf16 %v446_v34, %v444_v28  ;;  %v407_v40 = vpop.f32.mrb[2].mxu0  ;;  %v448_v41 = vpop.f32.mrb[2].mxu1 }
  0xf9   : > { %v501_v42 = vsel %vm485_vm2, %v497_v31, 0.0  ;;  %v500_v43 = vmul.f32 %v446_v34, %v446_v34  ;;  %v408_v44 = vpop.f32.mrb[3].mxu0  ;;  %v449_v45 = vpop.f32.mrb[3].mxu1  ;;  %v488_v46 = vadd.f32 %v487_v37, %v486_v30  ;;  %v504_v50 = vsel %vm485_vm2, %v499_v32, 0.0 }
  0xfa   : > { %v467_v47 = vrot.slane %v689_v36, %v466_v29  ;;  %v502_v48 = vsel %vm485_vm2, %v498_v38, 0.0  ;;  %v474_v49 = vrot.slane %v690_v39, %v466_v29  ;;  %v491_v54 = vsel %vm485_vm2, %v446_v34, 0.0 }
  0xfb   : > { %v490_v51 = vadd.f32 %v489_v35, %v488_v46  ;;  %v503_v52 = vadd.f32 %v502_v48, %v501_v42  ;;  %v506_v57 = vsel %vm485_vm2, %v500_v43, 0.0 }
  0xfc   : > { %v475_v53 = vcombine.low %v467_v47, %v474_v49 }
  0xfd   : > { %v492_v55 = vadd.f32 %v491_v54, %v490_v51  ;;  %v505_v56 = vadd.f32 %v504_v50, %v503_v52 }
  0xfe   : > { %691 = vst.sshfl [vmem:[%s252_s28] sm:$0x55 pattern:$0x73625140] %v475_v53 }
  0xff   : > { %493 = vadd.xlane.f32.xlu0 %v492_v55  ;;  %v507_v58 = vadd.f32 %v506_v57, %v505_v56 }
 0x103   : > { %508 = vadd.xlane.f32.xlu0 %v507_v58 }
 0x18c   : > { %v494_v59 = vpop.xlane.xlu0 %493 }
 0x18d   : > { %496 = vst.msk [vmem:[%s258_s6] sm:$0x3] %vm495_vm3, %v494_v59 }
 0x190   : > { %v509_v60 = vpop.xlane.xlu0 %508 }
 0x191   : > { %510 = vst.msk [vmem:[%s264_s9] sm:$0x3] %vm495_vm3, %v509_v60 }
 0x192 PF: > { %s15_s17 = sadd.s32 1, %s765_s17   ;;  %s854_s15 = smov %s761_s16 }
 0x193   : > { %p12_p5 = scmp.ge.s32.totalorder %s15_s17, 4   ;;  %s855_s16 = smov %s857_s18 }
 0x195   :  { %14 = sbr.rel (!%p12_p5) target bundleno = 2 (0x2), region = 82 }

// kernel: residual_layer_forward.6
= control target key start
LH: loop header
LB: loop body
LE: loop exit
PB: predicated region body
PF: predicated region fallthrough
CT: control target
= control target key end

     0   :  { %s829_s21 = smov 0   ;;  %s831_s22 = smov 0   ;;  %s882_s0 = inlined_call_operand.vmem [shape: bf16[2,2,512], index: 0, kind: input, shape index: {}]   ;;  %s883_s1 = inlined_call_operand.vmem [shape: bf16[16,2], index: 1, kind: input, shape index: {}]   ;;  %s884_s2 = inlined_call_operand.vmem [shape: f32[2,1], index: 2, kind: input, shape index: {}]   ;;  %s885_s3 = inlined_call_operand.vmem [shape: f32[2,1], index: 3, kind: input, shape index: {}]   ;;  %s886_s4 = inlined_call_operand.vmem [shape: bf16[2,16,512], index: 4, kind: output, shape index: {0}]   ;;  %s887_s5 = inlined_call_operand.vmem [shape: f32[2,16,1], index: 5, kind: output, shape index: {1}]   ;;  %s888_s6 = inlined_call_operand.vmem [shape: f32[2,16,1], index: 6, kind: output, shape index: {2}]  }
   0x1   :  { %s833_s23 = smov 0  }
   0x2 LB: > { %s29_s24 = sadd.s32 1, %s785_s22  ;;  %p712_p0 = scmp.ge.s32.totalorder %s789_s23, 1  ;;  %s789_s23 = sphi %s833_s23, %s17_s23   ;;  %s785_s22 = sphi %s831_s22, %s890_s22   ;;  %s781_s21 = sphi %s829_s21, %s889_s21  }
   0x3   : > { %p31_p1 = scmp.ge.s32.totalorder %s29_s24, 2  ;;  %p241_p2 = scmp.lt.s32.totalorder %s789_s23, 3 }
   0x5   : > { %s892_s24 = smov (%p31_p1, %s29_s24), 0  ;;  %p242_p3 = pnand %p712_p0, %p241_p2 }
   0x6   : > { %v326_v0 = vld [vmem:[%s884_s2] sm:$0x3] (!%p242_p3)  ;;  %v791_v1 = vmov (!%p242_p3), 0   ;;  %p291_p4 = scmp.lt.s32.totalorder (!%p242_p3), %s781_s21, 1  ;;  %v792_v3 = vmov (!%p242_p3), 269488144   ;;  %v334_v5 = vlaneseq (!%p242_p3) }
   0x7   : > { %245 = sbr.rel (%p242_p3) target bundleno = 527 (0x20f), region = 36  ;;  %765 = vset.pattern.permute.xlu0 (!%p242_p3), %v791_v1  ;;  %437 = vmatprep.mubr.bf16.mxu0 (!%p242_p3), %v791_v1  ;;  %v340_v2 = vld [vmem:[%s885_s3] sm:$0x3] (!%p242_p3)  ;;  %v332_v4 = vunpack.c.l.s4 (!%p242_p3), %v792_v3  ;;  %v793_v10 = vmov (!%p242_p3), 1983009808   ;;  %vm392_vm0 = vcmask (!%p242_p3), 1040384  }
   0x8   : > { %329 = vperm.xlu0 (!%p242_p3), %765, %v326_v0   ;;  %480 = vmatprep.mubr.bf16.mxu1 (!%p242_p3), %v791_v1  ;;  %v335_v7 = vshrl.u32 (!%p242_p3), %v334_v5, 7  ;;  %v358_v11 = vunpack.c.l.s4 (!%p242_p3), %v793_v10  ;;  %v766_v32 = vld [vmem:[%s883_s1] sm:$0xff] (!%p242_p3)   ;;  %vm388_vm1 = vcmask (!%p242_p3), 15360   ;;  %vm529_vm2 = vcmask (!%p242_p3), 7168  }
   0x9   : > { %v333_v6 = vunpack.c.0.s8 (!%p242_p3), %v332_v4 }
   0xa   : > { %v359_v15 = vunpack.c.0.s8 (!%p242_p3), %v358_v11 }
   0xb   : > { %v336_v8 = vsub.s32 (!%p242_p3), %v333_v6, %v335_v7 }
   0xc   : > { %343 = vperm.xlu0 (!%p242_p3), %765, %v340_v2   ;;  %v362_v20 = vsub.s32 (!%p242_p3), %v359_v15, %v335_v7 }
   0xe   : > { %s894_s21 = smov (!%p291_p4, %s781_s21), 1 }
   0xf   : > { %s713_s29 = sshll.u32 %s894_s21, 2  ;;  %s731_s11 = sshll.u32 %s894_s21, 5 }
  0x10   : > { %s297_s8 = scalar_lea.vmem %s882_s0, %s713_s29  ;;  %s307_s14 = scalar_lea.vmem %s886_s4, %s731_s11 }
  0x11   : > { %v324_v9 = vld [vmem:[%s297_s8] sm:$0xf]  ;;  %s732_s15 = sshll.u32 %s894_s21, 4 }
  0x12   : > { %v325_v13 = vunpack.c.l.bf16 %v324_v9  ;;  %s314_s18 = scalar_lea.vmem %s887_s5, %s732_s15  ;;  %s321_s25 = scalar_lea.vmem %s888_s6, %s732_s15 }
  0x87   : > { %v330_v12 = vpop.permute.xlu0 %329 }
  0x88   : > { %v337_v14 = vrot.slane %v330_v12, %v336_v8 }
  0x8a   : > { %v339_v17 = vmul.f32 %v337_v14, %v325_v13 }
  0x8b   : > { %v344_v16 = vpop.permute.xlu0 %343 }
  0x8c   : > { %v351_v18 = vrot.slane %v344_v16, %v336_v8 }
  0x8e   : > { %v353_v19 = vadd.f32 %v351_v18, %v339_v17 }
  0x90   : > { %v354_v21 = vmax.f32 %v353_v19, 0.0 }
  0x92   : > { %v356_v22 = vcombine.high %v354_v21, %v354_v21  ;;  %v363_v23 = vrot.slane %v354_v21, %v362_v20 }
  0x94   : > { %v371_v24 = vcombine.high %v363_v23, %v363_v23  ;;  %v377_v25 = vpack.c.bf16 %v363_v23, %v363_v23  ;;  %v370_v26 = vrot.slane %v356_v22, %v362_v20 }
  0x96   : > { %v378_v27 = vpack.c.bf16 %v371_v24, %v371_v24  ;;  %v372_v28 = vcombine.high %v370_v26, %v370_v26  ;;  %v379_v29 = vpack.c.bf16 %v370_v26, %v370_v26  ;;  %v394_v30 = vsel %vm392_vm0, %v377_v25, 0 }
  0x98   : > { %721 = vmatprep.subr.msk.bf16.mxu0 %vm392_vm0, %v378_v27  ;;  %v380_v31 = vpack.c.bf16 %v372_v28, %v372_v28  ;;  %v400_v33 = vsel %vm392_vm0, %v379_v29, 0 }
  0x99   : > { %406 = vmatpush1.bf16.msra.mxu0 %v394_v30 }
  0x9a   : > { %723 = vmatprep.subr.msk.bf16.mxu1 %vm392_vm0, %v380_v31 }
  0x9b   : > { %449 = vmatpush1.bf16.msra.mxu1 %v400_v33 }
  0x9c   : > { %722 = vmatmul.mubr.msk.bf16.vlgmr.msra.gmra.mrb[0].mxu0 %vm388_vm1, %v766_v32 }
  0x9e   : > { %724 = vmatmul.mubr.msk.bf16.vlgmr.msra.gmra.mrb[0].mxu1 %vm388_vm1, %v766_v32 }
 0x16f   : > { %v439_v34 = vpop.f32.mrb[0].mxu0 }
 0x170   : > { %v532_v35 = vmul.f32 %v439_v34, %v439_v34  ;;  %v441_v36 = vpop.f32.mrb[1].mxu0 }
 0x171   : > { %v734_v37 = vpack.c.bf16 %v441_v36, %v439_v34  ;;  %v519_v38 = vadd.f32 %v441_v36, %v439_v34  ;;  %v533_v39 = vmul.f32 %v441_v36, %v441_v36  ;;  %v443_v40 = vpop.f32.mrb[2].mxu0  ;;  %v482_v41 = vpop.f32.mrb[0].mxu1 }
 0x172   : > { %v536_v42 = vmul.f32 %v443_v40, %v443_v40  ;;  %v534_v43 = vmul.f32 %v482_v41, %v482_v41  ;;  %v445_v44 = vpop.f32.mrb[3].mxu0  ;;  %v484_v45 = vpop.f32.mrb[1].mxu1 }
 0x173   : > { %515 = vst [vmem:[%s307_s14] sm:$0xff] %v734_v37  ;;  %v736_v46 = vpack.c.bf16 %v445_v44, %v443_v40  ;;  %v524_v47 = vadd.f32 %v445_v44, %v443_v40  ;;  %v537_v48 = vmul.f32 %v445_v44, %v445_v44  ;;  %v735_v49 = vpack.c.bf16 %v484_v45, %v482_v41  ;;  %v486_v50 = vpop.f32.mrb[2].mxu1 }
 0x174   : > { %v538_v51 = vmul.f32 %v486_v50, %v486_v50  ;;  %v488_v52 = vpop.f32.mrb[3].mxu1  ;;  %v520_v53 = vadd.f32 %v519_v38, %v482_v41  ;;  %v540_v54 = vadd.f32 %v533_v39, %v532_v35  ;;  %v535_v59 = vmul.f32 %v484_v45, %v484_v45 }
 0x175   : > { %517 = vst [vmem:[%s307_s14 + $0x10] sm:$0xff] %v736_v46  ;;  %v545_v55 = vadd.f32 %v537_v48, %v536_v42  ;;  %516 = vst [vmem:[%s307_s14 + $0x8] sm:$0xff] %v735_v49  ;;  %v737_v56 = vpack.c.bf16 %v488_v52, %v486_v50  ;;  %v525_v57 = vadd.f32 %v524_v47, %v486_v50 }
 0x176   : > { %v521_v58 = vadd.f32 %v520_v53, %v484_v45  ;;  %v541_v60 = vadd.f32 %v540_v54, %v534_v43  ;;  %v539_v61 = vmul.f32 %v488_v52, %v488_v52 }
 0x177   : > { %518 = vst [vmem:[%s307_s14 + $0x18] sm:$0xff] %v737_v56  ;;  %v526_v62 = vadd.f32 %v525_v57, %v488_v52  ;;  %v546_v63 = vadd.f32 %v545_v55, %v538_v51 }
 0x178   : > { %522 = vadd.xlane.f32.xlu1 %v521_v58  ;;  %v542_v0 = vadd.f32 %v541_v60, %v535_v59 }
 0x179   : > { %v547_v1 = vadd.f32 %v546_v63, %v539_v61 }
 0x17a   : > { %543 = vadd.xlane.f32.xlu0 %v542_v0 }
 0x17c   : > { %527 = vadd.xlane.f32.xlu1 %v526_v62 }
 0x180   : > { %548 = vadd.xlane.f32.xlu1 %v547_v1 }
 0x205   : > { %v523_v2 = vpop.xlane.xlu1 %522 }
 0x206   : > { %530 = vst.msk [vmem:[%s314_s18] sm:$0xff] %vm529_vm2, %v523_v2 }
 0x207   : > { %v544_v3 = vpop.xlane.xlu0 %543 }
 0x208   : > { %550 = vst.msk [vmem:[%s321_s25] sm:$0xff] %vm529_vm2, %v544_v3 }
 0x209   : > { %v528_v4 = vpop.xlane.xlu1 %527 }
 0x20a   : > { %531 = vst.msk [vmem:[%s314_s18 + $0x8] sm:$0xff] %vm529_vm2, %v528_v4 }
 0x20d   : > { %v549_v5 = vpop.xlane.xlu1 %548 }
 0x20e   : > { %551 = vst.msk [vmem:[%s321_s25 + $0x8] sm:$0xff] %vm529_vm2, %v549_v5 }
 0x20f PF: > { %s17_s23 = sadd.s32 1, %s789_s23   ;;  %s889_s21 = smov %s785_s22 }
 0x210   : > { %p14_p5 = scmp.ge.s32.totalorder %s17_s23, 4   ;;  %s890_s22 = smov %s892_s24 }
 0x212   :  { %16 = sbr.rel (!%p14_p5) target bundleno = 2 (0x2), region = 90 }

// kernel: residual_layer_forward.7
= control target key start
LH: loop header
LB: loop body
LE: loop exit
PB: predicated region body
PF: predicated region fallthrough
CT: control target
= control target key end

     0   :  { %s704_s18 = smov 0   ;;  %s706_s19 = smov 0   ;;  %s759_s0 = inlined_call_operand.vmem [shape: bf16[2,16,512], index: 0, kind: input, shape index: {}]   ;;  %s760_s1 = inlined_call_operand.vmem [shape: f32[16,1], index: 1, kind: input, shape index: {}]   ;;  %s761_s2 = inlined_call_operand.vmem [shape: f32[16,1], index: 2, kind: input, shape index: {}]   ;;  %s762_s3 = inlined_call_operand.vmem [shape: f32[2,8,512], index: 3, kind: input, shape index: {}]   ;;  %s763_s4 = inlined_call_operand.vmem [shape: bf16[16,8], index: 4, kind: input, shape index: {}]   ;;  %s764_s5 = inlined_call_operand.vmem [shape: f32[2,16,512], index: 5, kind: output, shape index: {}]  }
   0x1   :  { %s708_s20 = smov 0  }
   0x2 LB: > { %s27_s21 = sadd.s32 1, %s667_s19  ;;  %p604_p0 = scmp.ge.s32.totalorder %s671_s20, 1  ;;  %s671_s20 = sphi %s708_s20, %s15_s20   ;;  %s667_s19 = sphi %s706_s19, %s766_s19   ;;  %s663_s18 = sphi %s704_s18, %s765_s18  }
   0x3   : > { %p29_p1 = scmp.ge.s32.totalorder %s27_s21, 2  ;;  %p225_p2 = scmp.lt.s32.totalorder %s671_s20, 3 }
   0x5   : > { %s768_s21 = smov (%p29_p1, %s27_s21), 0  ;;  %p226_p3 = pnand %p604_p0, %p225_p2 }
   0x6   : > { %p271_p4 = scmp.lt.s32.totalorder (!%p226_p3), %s663_s18, 1  ;;  %v673_v0 = vmov (!%p226_p3), 0   ;;  %v313_v1 = vld [vmem:[%s760_s1] sm:$0xff] (!%p226_p3)  ;;  %v314_v3 = vld [vmem:[%s760_s1 + $0x8] sm:$0xff] (!%p226_p3)  ;;  %vm380_vm0 = vcmask (!%p226_p3), 1043456   ;;  %vm376_vm1 = vcmask (!%p226_p3), 64512  }
   0x7   : > { %229 = sbr.rel (%p226_p3) target bundleno = 243 (0xf3), region = 40  ;;  %425 = vmatprep.mubr.bf16.mxu0 (!%p226_p3), %v673_v0  ;;  %468 = vmatprep.mubr.bf16.mxu1 (!%p226_p3), %v673_v0  ;;  %v333_v2 = vld [vmem:[%s761_s2] sm:$0xff] (!%p226_p3)  ;;  %v334_v4 = vld [vmem:[%s761_s2 + $0x8] sm:$0xff] (!%p226_p3) }
   0x8   : > { %646 = vset.pattern.permute.xlu0 (!%p226_p3), %v673_v0  ;;  %647 = vset.pattern.permute.xlu1 (!%p226_p3), %v673_v0  ;;  %v648_v14 = vld [vmem:[%s763_s4] sm:$0xff] (!%p226_p3)  }
   0x9   : > { %317 = vperm.xlu0 (!%p226_p3), %646, %v313_v1   ;;  %337 = vperm.xlu1 (!%p226_p3), %647, %v333_v2  }
   0xd   : > { %322 = vperm.xlu0 (!%p226_p3), %646, %v314_v3   ;;  %342 = vperm.xlu1 (!%p226_p3), %647, %v334_v4  }
   0xe   : > { %s770_s18 = smov (!%p271_p4, %s663_s18), 1 }
   0xf   : > { %s618_s26 = sshll.u32 %s770_s18, 5  ;;  %s620_s14 = sshll.u32 %s770_s18, 6 }
  0x10   : > { %s288_s8 = scalar_lea.vmem %s762_s3, %s618_s26  ;;  %s278_s13 = scalar_lea.vmem %s759_s0, %s618_s26 }
  0x11   : > { %v364_v5 = vld [vmem:[%s288_s8 + $0x8] sm:$0xff]  ;;  %v366_v6 = vld [vmem:[%s288_s8 + $0x18] sm:$0xff]  ;;  %v363_v7 = vld [vmem:[%s288_s8] sm:$0xff]  ;;  %s298_s17 = scalar_lea.vmem %s764_s5, %s620_s14 }
  0x12   : > { %v368_v8 = vpack.c.bf16 %v364_v5, %v364_v5  ;;  %v370_v9 = vpack.c.bf16 %v366_v6, %v366_v6  ;;  %v367_v10 = vpack.c.bf16 %v363_v7, %v363_v7  ;;  %v365_v11 = vld [vmem:[%s288_s8 + $0x10] sm:$0xff]  ;;  %v301_v16 = vld [vmem:[%s278_s13] sm:$0xff]  ;;  %v302_v17 = vld [vmem:[%s278_s13 + $0x8] sm:$0xff] }
  0x13   : > { %v369_v12 = vpack.c.bf16 %v365_v11, %v365_v11  ;;  %v305_v19 = vunpack.c.l.bf16 %v301_v16  ;;  %v303_v20 = vld [vmem:[%s278_s13 + $0x10] sm:$0xff]  ;;  %v307_v21 = vunpack.c.l.bf16 %v302_v17  ;;  %v304_v22 = vld [vmem:[%s278_s13 + $0x18] sm:$0xff]  ;;  %v306_v24 = vunpack.c.h.bf16 %v301_v16 }
  0x14   : > { %612 = vmatprep.subr.msk.bf16.mxu0 %vm380_vm0, %v368_v8  ;;  %614 = vmatprep.subr.msk.bf16.mxu1 %vm380_vm0, %v370_v9  ;;  %v382_v13 = vsel %vm380_vm0, %v367_v10, 0  ;;  %v309_v25 = vunpack.c.l.bf16 %v303_v20  ;;  %v308_v27 = vunpack.c.h.bf16 %v302_v17  ;;  %v310_v29 = vunpack.c.h.bf16 %v303_v20 }
  0x15   : > { %394 = vmatpush1.bf16.msra.mxu0 %v382_v13  ;;  %v388_v15 = vsel %vm380_vm0, %v369_v12, 0  ;;  %v311_v30 = vunpack.c.l.bf16 %v304_v22  ;;  %v312_v32 = vunpack.c.h.bf16 %v304_v22 }
  0x16   : > { %437 = vmatpush1.bf16.msra.mxu1 %v388_v15 }
  0x18   : > { %613 = vmatmul.mubr.msk.bf16.vlgmr.msra.gmra.mrb[0].mxu0 %vm376_vm1, %v648_v14 }
  0x19   : > { %615 = vmatmul.mubr.msk.bf16.vlgmr.msra.gmra.mrb[0].mxu1 %vm376_vm1, %v648_v14 }
  0x88   : > { %v318_v18 = vpop.permute.xlu0 %317  ;;  %v338_v23 = vpop.permute.xlu1 %337 }
  0x89   : > { %v325_v26 = vmul.f32 %v318_v18, %v305_v19  ;;  %v327_v31 = vmul.f32 %v318_v18, %v307_v21  ;;  %v326_v33 = vmul.f32 %v318_v18, %v306_v24  ;;  %v328_v36 = vmul.f32 %v318_v18, %v308_v27 }
  0x8b   : > { %v345_v35 = vadd.f32 %v338_v23, %v325_v26  ;;  %v347_v40 = vadd.f32 %v338_v23, %v327_v31  ;;  %v346_v42 = vadd.f32 %v338_v23, %v326_v33  ;;  %v348_v44 = vadd.f32 %v338_v23, %v328_v36 }
  0x8c   : > { %v323_v28 = vpop.permute.xlu0 %322  ;;  %v343_v39 = vpop.permute.xlu1 %342 }
  0x8d   : > { %v329_v34 = vmul.f32 %v323_v28, %v309_v25  ;;  %v330_v37 = vmul.f32 %v323_v28, %v310_v29  ;;  %v331_v38 = vmul.f32 %v323_v28, %v311_v30  ;;  %v332_v41 = vmul.f32 %v323_v28, %v312_v32 }
  0x8e   : > { %v353_v43 = vmax.f32 %v345_v35, 0.0  ;;  %v355_v46 = vmax.f32 %v347_v40, 0.0  ;;  %v354_v51 = vmax.f32 %v346_v42, 0.0  ;;  %v356_v55 = vmax.f32 %v348_v44, 0.0 }
  0x8f   : > { %v349_v45 = vadd.f32 %v343_v39, %v329_v34  ;;  %v351_v47 = vadd.f32 %v343_v39, %v331_v38  ;;  %v350_v48 = vadd.f32 %v343_v39, %v330_v37  ;;  %v352_v49 = vadd.f32 %v343_v39, %v332_v41 }
  0x91   : > { %v357_v56 = vmax.f32 %v349_v45, 0.0  ;;  %v359_v61 = vmax.f32 %v351_v47, 0.0  ;;  %v358_v62 = vmax.f32 %v350_v48, 0.0  ;;  %v360_v3 = vmax.f32 %v352_v49, 0.0 }
  0xeb   : > { %v427_v50 = vpop.f32.mrb[0].mxu0 }
  0xec   : > { %v479_v52 = vadd.f32 %v427_v50, %v353_v43  ;;  %v470_v53 = vpop.f32.mrb[0].mxu1  ;;  %v429_v54 = vpop.f32.mrb[1].mxu0 }
  0xed   : > { %v481_v57 = vadd.f32 %v470_v53, %v355_v46  ;;  %v480_v58 = vadd.f32 %v429_v54, %v354_v51  ;;  %v472_v59 = vpop.f32.mrb[1].mxu1  ;;  %v431_v60 = vpop.f32.mrb[2].mxu0 }
  0xee   : > { %487 = vst [vmem:[%s298_s17] sm:$0xff] %v479_v52  ;;  %v482_v63 = vadd.f32 %v472_v59, %v356_v55  ;;  %v483_v0 = vadd.f32 %v431_v60, %v357_v56  ;;  %v474_v1 = vpop.f32.mrb[2].mxu1  ;;  %v433_v2 = vpop.f32.mrb[3].mxu0 }
  0xef   : > { %489 = vst [vmem:[%s298_s17 + $0x10] sm:$0xff] %v481_v57  ;;  %488 = vst [vmem:[%s298_s17 + $0x8] sm:$0xff] %v480_v58  ;;  %v485_v4 = vadd.f32 %v474_v1, %v359_v61  ;;  %v484_v5 = vadd.f32 %v433_v2, %v358_v62  ;;  %v476_v6 = vpop.f32.mrb[3].mxu1 }
  0xf0   : > { %490 = vst [vmem:[%s298_s17 + $0x18] sm:$0xff] %v482_v63  ;;  %491 = vst [vmem:[%s298_s17 + $0x20] sm:$0xff] %v483_v0  ;;  %v486_v7 = vadd.f32 %v476_v6, %v360_v3 }
  0xf1   : > { %493 = vst [vmem:[%s298_s17 + $0x30] sm:$0xff] %v485_v4  ;;  %492 = vst [vmem:[%s298_s17 + $0x28] sm:$0xff] %v484_v5 }
  0xf2   : > { %494 = vst [vmem:[%s298_s17 + $0x38] sm:$0xff] %v486_v7 }
  0xf3 PF: > { %s15_s20 = sadd.s32 1, %s671_s20   ;;  %s765_s18 = smov %s667_s19 }
  0xf4   : > { %p12_p5 = scmp.ge.s32.totalorder %s15_s20, 4   ;;  %s766_s19 = smov %s768_s21 }
  0xf6   :  { %14 = sbr.rel (!%p12_p5) target bundleno = 2 (0x2), region = 73 }

</bundles_post_ra>
